<compile_context>
chip_gen: v7x
topology: tpu7x:2x2x1
jax: 0.10.0
libtpu: 0.0.40
codegen_flags: <defaults>
</compile_context>

<pallas_src>
import functools

import jax
import jax.numpy as jnp
from jax.experimental import pallas as pl
from jax.experimental.pallas import tpu as pltpu

LANE = 128              # feature padding unit (TPU lane width)
TB_MAX = 512            # max batch rows per grid step (amortizes ~0.35us/step overhead)
MIN_CORE_SPLIT_B = 128  # once B >= this, force >=2 grid steps so v7x's 2 TCs both work


def _round_up(x: int, m: int) -> int:
    return (x + m - 1) // m * m


def _pick_tb(B: int) -> int:
    """Batch rows per grid step.  >=2 steps for large B (v7x megacore), else one tile."""
    if B >= MIN_CORE_SPLIT_B:
        tb = _round_up(-(-B // 2), 8)   # ceil(B/2), rounded to sublane multiple
    else:
        tb = _round_up(B, 8)
    return min(TB_MAX, tb)


# ---------------------------------------------------------------------------
# One-time parameter packing (NOT on the per-call forward path)
# ---------------------------------------------------------------------------
def pack_params(params):
    """Pad every layer's [in, out] weight / [out] bias to 128-multiples and concatenate
    column-wise into one bf16 weight slab (D_PAD, L*D_PAD) and one f32 bias slab
    (1, L*D_PAD).  Zero padding propagates exact zeros through matmul + ReLU."""
    num_layers = len(params)
    d_pad = max(LANE, max(_round_up(max(w.shape[0], w.shape[1]), LANE) for w, _ in params))
    w_cat = jnp.zeros((d_pad, num_layers * d_pad), jnp.float32)
    b_cat = jnp.zeros((1, num_layers * d_pad), jnp.float32)
    for l, (w, b) in enumerate(params):
        w_cat = w_cat.at[: w.shape[0], l * d_pad: l * d_pad + w.shape[1]].set(w)
        b_cat = b_cat.at[0, l * d_pad: l * d_pad + b.shape[0]].set(b)
    return w_cat.astype(jnp.bfloat16), b_cat


# ---------------------------------------------------------------------------
# Kernel: one batch tile per grid step; weight/bias slabs stay VMEM-resident
# ---------------------------------------------------------------------------
def qnet_kernel(x_ref, w_ref, b_ref, o_ref, *, num_layers, d_pad, num_actions):
    tb, first_in = x_ref.shape
    x = x_ref[...]                                              # (tb, obs) f32, unpadded

    # ---- Layer 0 on the VPU --------------------------------------------------
    # Only `obs` of the 128 padded input columns are live; `obs` broadcast FMAs in f32
    # replace a (tb,128)x(128,128) MXU pass and remove any need to zero-extend x.
    h = jnp.broadcast_to(b_ref[:, 0:d_pad], (tb, d_pad))        # start from bias, f32
    for k in range(first_in):
        wk = w_ref[k:k + 1, 0:d_pad].astype(jnp.float32)        # (1, d_pad) row, bf16->f32
        h = h + x[:, k:k + 1] * wk
    h = jnp.maximum(h, 0.0)                                     # ReLU

    # ---- Layers 1..L-1 on the MXU (bf16 operands, f32 accumulation) -----------
    for l in range(1, num_layers):
        w = w_ref[:, l * d_pad:(l + 1) * d_pad]                 # (d_pad, d_pad) bf16, aligned
        b = b_ref[:, l * d_pad:(l + 1) * d_pad]                 # (1, d_pad) f32
        h = jnp.dot(h.astype(jnp.bfloat16), w,
                    preferred_element_type=jnp.float32) + b
        if l < num_layers - 1:
            h = jnp.maximum(h, 0.0)                             # ReLU

    # Write only the valid action lanes (block last dim == true array dim).
    o_ref[...] = h[:, :num_actions].astype(o_ref.dtype)


# ---------------------------------------------------------------------------
# Forward wrapper: no per-call padding, batch-tiled 'parallel' grid
# ---------------------------------------------------------------------------
@functools.partial(jax.jit, static_argnames=("num_actions",))
def qnetwork_forward(x, w_cat, b_cat, *, num_actions):
    """x: [B, num_observations] f32.  w_cat/b_cat: packed params from pack_params."""
    B, obs = x.shape
    d_pad = w_cat.shape[0]
    num_layers = w_cat.shape[1] // d_pad

    tb = _pick_tb(B)
    grid = (pl.cdiv(B, tb),)

    flops = 2 * B * obs * d_pad + 2 * B * d_pad * d_pad * (num_layers - 1)
    bytes_accessed = (x.size * x.dtype.itemsize
                      + w_cat.size * w_cat.dtype.itemsize
                      + b_cat.size * b_cat.dtype.itemsize
                      + B * num_actions * 4)

    kernel = functools.partial(
        qnet_kernel, num_layers=num_layers, d_pad=d_pad, num_actions=num_actions)

    return pl.pallas_call(
        kernel,
        out_shape=jax.ShapeDtypeStruct((B, num_actions), jnp.float32),
        grid=grid,
        in_specs=[
            pl.BlockSpec((tb, obs), lambda i: (i, 0)),                      # batch tile of x
            pl.BlockSpec((d_pad, num_layers * d_pad), lambda i: (0, 0)),    # resident weights
            pl.BlockSpec((1, num_layers * d_pad), lambda i: (0, 0)),        # resident biases
        ],
        out_specs=pl.BlockSpec((tb, num_actions), lambda i: (i, 0)),
        compiler_params=pltpu.CompilerParams(dimension_semantics=("parallel",)),
        cost_estimate=pl.CostEstimate(flops=flops, transcendentals=0,
                                      bytes_accessed=bytes_accessed),
    )(x, w_cat, b_cat)


# ---------------------------------------------------------------------------
# Init (mirrors nn.Linear default init; weights stored [in, out]) + references
# ---------------------------------------------------------------------------
def init_qnetwork_params(key, num_observations, num_actions, hidden_sizes=(120, 84)):
    sizes = [num_observations, *hidden_sizes, num_actions]
    params = []
    for i in range(len(sizes) - 1):
        fan_in, fan_out = sizes[i], sizes[i + 1]
        key, kw, kb = jax.random.split(key, 3)
        bound = 1.0 / jnp.sqrt(jnp.float32(fan_in))
        w = jax.random.uniform(kw, (fan_in, fan_out), jnp.float32, -bound, bound)
        b = jax.random.uniform(kb, (fan_out,), jnp.float32, -bound, bound)
        params.append((w, b))
    return params


def reference_forward(x, params):
    """Pure f32 reference (the original nn.Module semantics)."""
    h = x
    for i, (w, b) in enumerate(params):
        h = h @ w + b
        if i < len(params) - 1:
            h = jnp.maximum(h, 0.0)
    return h


def reference_forward_kernel_math(x, params):
    """Mirrors the kernel's numerics exactly: bf16-rounded weights, layer-0 as f32
    broadcast FMAs, layers>=1 as bf16 x bf16 matmuls with f32 accumulation."""
    h = x
    for i, (w, b) in enumerate(params):
        w_q = w.astype(jnp.bfloat16)
        if i == 0:
            acc = jnp.broadcast_to(b[None, :], (h.shape[0], w.shape[1])).astype(jnp.float32)
            for k in range(w.shape[0]):
                acc = acc + h[:, k:k + 1] * w_q[k][None, :].astype(jnp.float32)
            h = acc
        else:
            h = jnp.dot(h.astype(jnp.bfloat16), w_q,
                        preferred_element_type=jnp.float32) + b[None, :]
        if i < len(params) - 1:
            h = jnp.maximum(h, 0.0)
    return h


if __name__ == "__main__":
    num_observations = 4   # CartPole-like observation dim
    num_actions = 2

    key = jax.random.PRNGKey(0)
    key, kx = jax.random.split(key)
    params = init_qnetwork_params(key, num_observations, num_actions)
    w_cat, b_cat = pack_params(params)   # done ONCE, outside the forward path

    for batch in (2, 300, 1024):   # single-tile, ragged 2-step, TB_MAX 2-step grids
        x = jax.random.normal(jax.random.fold_in(kx, batch),
                              (batch, num_observations), jnp.float32)
        out = jax.block_until_ready(
            qnetwork_forward(x, w_cat, b_cat, num_actions=num_actions))
        assert out.shape == (batch, num_actions), out.shape

        # Tight check against a reference performing the same (bf16-weight) math.
        ref_q = reference_forward_kernel_math(x, params)
        assert jnp.allclose(out, ref_q, atol=2e-3, rtol=2e-3), (
            batch, float(jnp.max(jnp.abs(out - ref_q))))

        # Loose check against the pure-f32 module semantics (bf16 weight rounding only).
        ref_f32 = reference_forward(x, params)
        assert jnp.allclose(out, ref_f32, atol=5e-2, rtol=5e-2), (
            batch, float(jnp.max(jnp.abs(out - ref_f32))))

    print("KERNEL_OK")
</pallas_src>

<mosaic_0001>
module attributes {stable_mosaic.version = 11 : i64} {
  func.func @qnet_kernel(%arg0: i32, %arg1: memref<8x4xf32, #tpu.memory_space<vmem>>, %arg2: memref<128x384xbf16, #tpu.memory_space<vmem>>, %arg3: memref<1x384xf32, #tpu.memory_space<vmem>>, %arg4: memref<8x2xf32, #tpu.memory_space<vmem>>) attributes {dimension_semantics = [#tpu.dimension_semantics<parallel>], iteration_bounds = array<i64: 1>, scalar_prefetch = 0 : i64, scratch_operands = 0 : i64, tpu.core_type = #tpu.core_type<tc>, window_params = [{transform_indices = @transform_0, window_bounds = array<i64: 8, 4>}, {pipeline_mode = #tpu.pipeline_mode<synchronous>, transform_indices = @transform_1, window_bounds = array<i64: 128, 384>}, {pipeline_mode = #tpu.pipeline_mode<synchronous>, transform_indices = @transform_2, window_bounds = array<i64: 1, 384>}, {transform_indices = @transform_3, window_bounds = array<i64: 8, 2>}]} {
    %c0 = arith.constant 0 : index
    %c0_0 = arith.constant 0 : index
    %0 = vector.load %arg1[%c0, %c0_0] : memref<8x4xf32, #tpu.memory_space<vmem>>, vector<8x4xf32>
    %c0_1 = arith.constant 0 : index
    %c0_2 = arith.constant 0 : index
    %1 = vector.load %arg3[%c0_1, %c0_2] : memref<1x384xf32, #tpu.memory_space<vmem>>, vector<1x128xf32>
    %2 = vector.shape_cast %1 : vector<1x128xf32> to vector<1x128xf32>
    %3 = vector.broadcast %2 : vector<1x128xf32> to vector<8x128xf32>
    %c0_3 = arith.constant 0 : index
    %c0_4 = arith.constant 0 : index
    %4 = vector.load %arg2[%c0_3, %c0_4] : memref<128x384xbf16, #tpu.memory_space<vmem>>, vector<1x128xbf16>
    %5 = arith.extf %4 : vector<1x128xbf16> to vector<1x128xf32>
    %6 = vector.extract_strided_slice %0 {offsets = [0, 0], sizes = [8, 1], strides = [1, 1]} : vector<8x4xf32> to vector<8x1xf32>
    %7 = vector.broadcast %6 : vector<8x1xf32> to vector<8x128xf32>
    %8 = vector.broadcast %5 : vector<1x128xf32> to vector<8x128xf32>
    %9 = arith.mulf %7, %8 : vector<8x128xf32>
    %10 = arith.addf %3, %9 : vector<8x128xf32>
    %c1 = arith.constant 1 : index
    %c0_5 = arith.constant 0 : index
    %11 = vector.load %arg2[%c1, %c0_5] : memref<128x384xbf16, #tpu.memory_space<vmem>>, vector<1x128xbf16>
    %12 = arith.extf %11 : vector<1x128xbf16> to vector<1x128xf32>
    %13 = vector.extract_strided_slice %0 {offsets = [0, 1], sizes = [8, 1], strides = [1, 1]} : vector<8x4xf32> to vector<8x1xf32>
    %14 = vector.broadcast %13 : vector<8x1xf32> to vector<8x128xf32>
    %15 = vector.broadcast %12 : vector<1x128xf32> to vector<8x128xf32>
    %16 = arith.mulf %14, %15 : vector<8x128xf32>
    %17 = arith.addf %10, %16 : vector<8x128xf32>
    %c2 = arith.constant 2 : index
    %c0_6 = arith.constant 0 : index
    %18 = vector.load %arg2[%c2, %c0_6] : memref<128x384xbf16, #tpu.memory_space<vmem>>, vector<1x128xbf16>
    %19 = arith.extf %18 : vector<1x128xbf16> to vector<1x128xf32>
    %20 = vector.extract_strided_slice %0 {offsets = [0, 2], sizes = [8, 1], strides = [1, 1]} : vector<8x4xf32> to vector<8x1xf32>
    %21 = vector.broadcast %20 : vector<8x1xf32> to vector<8x128xf32>
    %22 = vector.broadcast %19 : vector<1x128xf32> to vector<8x128xf32>
    %23 = arith.mulf %21, %22 : vector<8x128xf32>
    %24 = arith.addf %17, %23 : vector<8x128xf32>
    %c3 = arith.constant 3 : index
    %c0_7 = arith.constant 0 : index
    %25 = vector.load %arg2[%c3, %c0_7] : memref<128x384xbf16, #tpu.memory_space<vmem>>, vector<1x128xbf16>
    %26 = arith.extf %25 : vector<1x128xbf16> to vector<1x128xf32>
    %27 = vector.extract_strided_slice %0 {offsets = [0, 3], sizes = [8, 1], strides = [1, 1]} : vector<8x4xf32> to vector<8x1xf32>
    %28 = vector.broadcast %27 : vector<8x1xf32> to vector<8x128xf32>
    %29 = vector.broadcast %26 : vector<1x128xf32> to vector<8x128xf32>
    %30 = arith.mulf %28, %29 : vector<8x128xf32>
    %31 = arith.addf %24, %30 : vector<8x128xf32>
    %cst = arith.constant 0.000000e+00 : f32
    %32 = vector.broadcast %cst : f32 to vector<8x128xf32>
    %33 = arith.maximumf %31, %32 : vector<8x128xf32>
    %c0_8 = arith.constant 0 : index
    %c128 = arith.constant 128 : index
    %34 = vector.load %arg2[%c0_8, %c128] : memref<128x384xbf16, #tpu.memory_space<vmem>>, vector<128x128xbf16>
    %c0_9 = arith.constant 0 : index
    %c128_10 = arith.constant 128 : index
    %35 = vector.load %arg3[%c0_9, %c128_10] : memref<1x384xf32, #tpu.memory_space<vmem>>, vector<1x128xf32>
    %36 = arith.truncf %33 : vector<8x128xf32> to vector<8x128xbf16>
    %cst_11 = arith.constant dense<0.000000e+00> : vector<8x128xf32>
    %37 = tpu.matmul %36, %34, %cst_11 {dimension_numbers = #tpu.dot_dimension_numbers<[1], [0], [0], [1], [0, 0, 1, 1], [], []>} : vector<8x128xbf16>, vector<128x128xbf16>, vector<8x128xf32> -> vector<8x128xf32>
    %38 = vector.broadcast %35 : vector<1x128xf32> to vector<8x128xf32>
    %39 = arith.addf %37, %38 : vector<8x128xf32>
    %cst_12 = arith.constant 0.000000e+00 : f32
    %40 = vector.broadcast %cst_12 : f32 to vector<8x128xf32>
    %41 = arith.maximumf %39, %40 : vector<8x128xf32>
    %c0_13 = arith.constant 0 : index
    %c256 = arith.constant 256 : index
    %42 = vector.load %arg2[%c0_13, %c256] : memref<128x384xbf16, #tpu.memory_space<vmem>>, vector<128x128xbf16>
    %c0_14 = arith.constant 0 : index
    %c256_15 = arith.constant 256 : index
    %43 = vector.load %arg3[%c0_14, %c256_15] : memref<1x384xf32, #tpu.memory_space<vmem>>, vector<1x128xf32>
    %44 = arith.truncf %41 : vector<8x128xf32> to vector<8x128xbf16>
    %cst_16 = arith.constant dense<0.000000e+00> : vector<8x128xf32>
    %45 = tpu.matmul %44, %42, %cst_16 {dimension_numbers = #tpu.dot_dimension_numbers<[1], [0], [0], [1], [0, 0, 1, 1], [], []>} : vector<8x128xbf16>, vector<128x128xbf16>, vector<8x128xf32> -> vector<8x128xf32>
    %46 = vector.broadcast %43 : vector<1x128xf32> to vector<8x128xf32>
    %47 = arith.addf %45, %46 : vector<8x128xf32>
    %48 = vector.extract_strided_slice %47 {offsets = [0, 0], sizes = [8, 2], strides = [1, 1]} : vector<8x128xf32> to vector<8x2xf32>
    %c0_17 = arith.constant 0 : index
    %c0_18 = arith.constant 0 : index
    %49 = vector.load %arg4[%c0_17, %c0_18] : memref<8x2xf32, #tpu.memory_space<vmem>>, vector<8x2xf32>
    tpu.vector_store %arg4[%c0_17, %c0_18], %48 {strides = array<i32>} : memref<8x2xf32, #tpu.memory_space<vmem>>, vector<8x2xf32>,
    return
  }
  func.func @transform_0(%arg0: i32) -> (i32, i32) {
    %c0_i32 = arith.constant 0 : i32
    %c0_i32_0 = arith.constant 0 : i32
    return %arg0, %c0_i32 : i32, i32
  }
  func.func @transform_1(%arg0: i32) -> (i32, i32) {
    %c0_i32 = arith.constant 0 : i32
    %c0_i32_0 = arith.constant 0 : i32
    %c0_i32_1 = arith.constant 0 : i32
    return %c0_i32, %c0_i32_0 : i32, i32
  }
  func.func @transform_2(%arg0: i32) -> (i32, i32) {
    %c0_i32 = arith.constant 0 : i32
    %c0_i32_0 = arith.constant 0 : i32
    %c0_i32_1 = arith.constant 0 : i32
    return %c0_i32, %c0_i32_0 : i32, i32
  }
  func.func @transform_3(%arg0: i32) -> (i32, i32) {
    %c0_i32 = arith.constant 0 : i32
    %c0_i32_0 = arith.constant 0 : i32
    return %arg0, %c0_i32 : i32, i32
  }
}

</mosaic_0001>

<bundles_post_ra>
// kernel: qnetwork_forward.1
= control target key start
LH: loop header
LB: loop body
LE: loop exit
PB: predicated region body
PF: predicated region fallthrough
CT: control target
= control target key end

     0   :  { %8 = vsyncpa [#allocation3], 0  ;;  %s628_s0 = inlined_call_operand.hbm [shape: f32[2,4], index: 0, kind: input, shape index: {}]   ;;  %s629_s1 = inlined_call_operand.hbm [shape: bf16[128,384], index: 1, kind: input, shape index: {}]   ;;  %s630_s2 = inlined_call_operand.vmem [shape: f32[1,384], index: 2, kind: input, shape index: {}]   ;;  %s631_s3 = inlined_call_operand.hbm [shape: f32[2,2], index: 3, kind: output, shape index: {}]  }
   0x1   :  { %9 = vsyncpa [#allocation6], 0 }
   0x2   :  { %10 = vsyncpa [#allocation4], 0 }
   0x3   :  { %15 = vsyncadd [#allocation3], 96  ;;  %s526_s12 = smov [#allocation2]   ;;  %s454_s16 = scalar_lea.hbm %s628_s0, 32 }
   0x4   :  { %s16_s13 = sshll.u32 %s526_s12, 4  ;;  %p455_p0 = scmp.ne.s32.totalorder %s628_s0, %s454_s16  ;;  %s17_s13 = int_to_ptr.vmem [resolvable:$true] %s16_s13 }
   0x5   :  { %p458_p1 = scmp.lt.u32.totalorder %s454_s16, %s628_s0 }
   0x7   :  { %p460_p2 = pnand %p458_p1, %p455_p0 }
   0x9   :  { %463 = shalt.err (!%p460_p2)
}
   0xa   :  { %s464_s21 = scalar_lea.vmem %s17_s13, 32  ;;  %s468_s22 = scalar_lea.vmem %s17_s13, 128 }
   0xb   :  { %p465_p3 = scmp.ne.s32.totalorder %s17_s13, %s464_s21  ;;  %p469_p4 = scmp.lt.s32.totalorder %s17_s13, %s17_s13 }
   0xc   :  { %p470_p5 = scmp.lt.s32.totalorder %s468_s22, %s464_s21 }
   0xe   :  { %p471_p6 = por %p470_p5, %p469_p4 }
  0x10   :  { %p472_p7 = pnand %p471_p6, %p465_p3 }
  0x12   :  { %475 = shalt.err (!%p472_p7)
}
  0x13   :  { %s527_s23 = smov 32   ;;  %s528_s24 = smov 2  }
  0x14   :  { %22 = dma.hbm_to_vmem [thread:$0]  %s628_s0, 32, %s17_s13, [#allocation3], %s527_s23, %s527_s23, %s528_s24  }
  0x15   :  { %s529_s27 = smov [#allocation5]   ;;  %s476_s4 = scalar_lea.hbm %s629_s1, 3072 }
  0x16   :  { %s28_s28 = sshll.u32 %s529_s27, 4  ;;  %p477_p8 = scmp.ne.s32.totalorder %s629_s1, %s476_s4  ;;  %s29_s28 = int_to_ptr.vmem [resolvable:$true] %s28_s28 }
  0x17   :  { %p480_p9 = scmp.lt.u32.totalorder %s476_s4, %s629_s1 }
  0x19   :  { %p482_p10 = pnand %p480_p9, %p477_p8 }
  0x1b   :  { %485 = shalt.err (!%p482_p10)
}
  0x1c   :  { %s486_s9 = scalar_lea.vmem %s29_s28, 3072  ;;  %p491_p12 = scmp.lt.s32.totalorder %s29_s28, %s29_s28 }
  0x1d   :  { %p487_p11 = scmp.ne.s32.totalorder %s29_s28, %s486_s9  ;;  %p492_p13 = scmp.lt.s32.totalorder %s486_s9, %s486_s9 }
  0x1f   :  { %p493_p0 = por %p492_p13, %p491_p12 }
  0x21   :  { %p494_p1 = pnand %p493_p0, %p487_p11 }
  0x23   :  { %497 = shalt.err (!%p494_p1)
}
  0x24   :  { %s530_s0 = smov 192   ;;  %s531_s10 = smov 12  }
  0x25   :  { %34 = dma.hbm_to_vmem [thread:$0]  %s629_s1, 3072, %s29_s28, [#allocation6], %s530_s0, %s530_s0, %s531_s10  }
  0x26   :  { %520 = dma.done.wait [#allocation3], 128  }
  0x27   :  { %521 = vsyncadd [#allocation3], 4294967168 }
  0x28   :  { %522 = dma.done.wait [#allocation6], 3072  }
  0x29   :  { %523 = vsyncadd [#allocation6], 4294964224  ;;  %v532_v0 = vmov 0   ;;  %v533_v1 = vmov 2   ;;  %v534_v2 = vmov 0.0   ;;  %v44_v3 = vld [vmem:[#allocation2] sm:$0xff]  ;;  %v59_v20 = vlaneseq }
  0x2a   :  { %433 = vset.pattern.permute.xlu0 %v532_v0  ;;  %435 = vset.pattern.permute.xlu1 %v533_v1  ;;  %v438_v4 = vld [vmem:[#allocation5 + $0x4] ss:$12 sps:$4 sm:$0xff]   ;;  %v439_v5 = vld [vmem:[#allocation5 + $0x1c] ss:$12 sps:$4 sm:$0xff]   ;;  %v535_v6 = vmov 1   ;;  %v536_v7 = vmov 3  }
  0x2b   :  { %380 = vmatprep.subr.bf16.mxu0 %v534_v2  ;;  %400 = vmatprep.subr.bf16.mxu1 %v534_v2  ;;  %v440_v8 = vld [vmem:[#allocation5 + $0x34] ss:$12 sps:$4 sm:$0xff]   ;;  %v441_v9 = vld [vmem:[#allocation5 + $0x4c] ss:$12 sps:$4 sm:$0xff]   ;;  %v442_v10 = vld [vmem:[#allocation5 + $0x64] ss:$12 sps:$4 sm:$0xff]  }
  0x2c   :  { %56 = vperm.xlu0 %433, %v44_v3   ;;  %78 = vperm.xlu1 %435, %v44_v3   ;;  %vm537_vm0 = vmmov 0   ;;  %v446_v11 = vld [vmem:[#allocation5 + $0x8] ss:$12 sps:$4 sm:$0xff]   ;;  %v447_v13 = vld [vmem:[#allocation5 + $0x20] ss:$12 sps:$4 sm:$0xff]   ;;  %v60_v21 = vshrl.u32 %v59_v20, 7 }
  0x2d   :  { %381 = vmatpush3.bf16.msra.mxu0 %v438_v4  ;;  %396 = vmatprep.mubr.msk.bf16.mxu0 %vm537_vm0, %v534_v2  ;;  %v443_v12 = vld [vmem:[#allocation5 + $0x7c] ss:$12 sps:$4 sm:$0xff]   ;;  %v444_v14 = vld [vmem:[#allocation5 + $0x94] ss:$12 sps:$4 sm:$0xff]   ;;  %v448_v15 = vld [vmem:[#allocation5 + $0x38] ss:$12 sps:$4 sm:$0xff]  }
  0x2e   :  { %382 = vmatprep.subr.bf16.mxu0 %v534_v2  ;;  %416 = vmatprep.mubr.msk.bf16.mxu1 %vm537_vm0, %v534_v2  ;;  %v445_v16 = vld [vmem:[#allocation5 + $0xac] ss:$12 sps:$4 sm:$0xff]   ;;  %v449_v17 = vld [vmem:[#allocation5 + $0x50] ss:$12 sps:$4 sm:$0xff]   ;;  %v450_v18 = vld [vmem:[#allocation5 + $0x68] ss:$12 sps:$4 sm:$0xff]  }
  0x2f   :  { %401 = vmatpush3.bf16.msra.mxu1 %v446_v11  ;;  %v451_v19 = vld [vmem:[#allocation5 + $0x80] ss:$12 sps:$4 sm:$0xff]   ;;  %v61_v24 = vsub.s32 0, %v60_v21  ;;  %v71_v27 = vsub.s32 1, %v60_v21  ;;  %v83_v30 = vsub.s32 2, %v60_v21  ;;  %v93_v32 = vsub.s32 3, %v60_v21 }
  0x30   :  { %434 = vset.pattern.permute.xlu0 %v535_v6  ;;  %436 = vset.pattern.permute.xlu1 %v536_v7  ;;  %v52_v22 = vld [vmem:[#allocation5] sm:$0x1]  ;;  %v75_v25 = vld [vmem:[#allocation5] sm:$0x2]  ;;  %v343_v35 = vld [vmem:[%s630_s2] ss:$0 sm:$0xff] }
  0x31   :  { %66 = vperm.xlu0 %434, %v44_v3   ;;  %88 = vperm.xlu1 %436, %v44_v3   ;;  %v53_v23 = vunpack.c.l.bf16 %v52_v22  ;;  %v76_v29 = vunpack.c.l.bf16 %v75_v25  ;;  %v452_v49 = vld [vmem:[#allocation5 + $0x98] ss:$12 sps:$4 sm:$0xff]   ;;  %v453_v50 = vld [vmem:[#allocation5 + $0xb0] ss:$12 sps:$4 sm:$0xff]   ;;  %vm323_vm1 = vcmask 15360  }
  0x32   :  { %383 = vmatpush3.bf16.msra.mxu0 %v439_v5  ;;  %402 = vmatprep.subr.bf16.mxu1 %v534_v2  ;;  %v344_v51 = vld [vmem:[%s630_s2 + $0x1] ss:$0 sm:$0xff]  ;;  %v353_v59 = vld [vmem:[%s630_s2 + $0x2] ss:$0 sm:$0xff] }
  0x33   :  { %384 = vmatprep.subr.bf16.mxu0 %v534_v2  ;;  %403 = vmatpush3.bf16.msra.mxu1 %v447_v13  ;;  %v62_v26 = vrot.slane %v53_v23, %v61_v24  ;;  %v72_v34 = vrot.slane %v53_v23, %v71_v27  ;;  %v84_v36 = vrot.slane %v76_v29, %v83_v30 }
  0x34   :  { %404 = vmatprep.subr.bf16.mxu1 %v534_v2  ;;  %v94_v37 = vrot.slane %v76_v29, %v93_v32 }
  0x35   :  { %437 = vset.pattern.permute.xlu0 %v536_v7 }
  0x36   :  { %385 = vmatpush3.bf16.msra.mxu0 %v440_v8 }
  0x37   :  { %386 = vmatprep.subr.bf16.mxu0 %v534_v2  ;;  %405 = vmatpush3.bf16.msra.mxu1 %v448_v15 }
  0x38   :  { %406 = vmatprep.subr.bf16.mxu1 %v534_v2 }
  0x3a   :  { %387 = vmatpush3.bf16.msra.mxu0 %v441_v9 }
  0x3b   :  { %388 = vmatprep.subr.bf16.mxu0 %v534_v2  ;;  %407 = vmatpush3.bf16.msra.mxu1 %v449_v17 }
  0x3c   :  { %408 = vmatprep.subr.bf16.mxu1 %v534_v2 }
  0x3e   :  { %389 = vmatpush3.bf16.msra.mxu0 %v442_v10 }
  0x3f   :  { %390 = vmatprep.subr.bf16.mxu0 %v534_v2  ;;  %409 = vmatpush3.bf16.msra.mxu1 %v450_v18 }
  0x40   :  { %410 = vmatprep.subr.bf16.mxu1 %v534_v2 }
  0x42   :  { %391 = vmatpush3.bf16.msra.mxu0 %v443_v12 }
  0x43   :  { %392 = vmatprep.subr.bf16.mxu0 %v534_v2  ;;  %411 = vmatpush3.bf16.msra.mxu1 %v451_v19 }
  0x44   :  { %412 = vmatprep.subr.bf16.mxu1 %v534_v2 }
  0x46   :  { %393 = vmatpush3.bf16.msra.mxu0 %v444_v14 }
  0x47   :  { %394 = vmatprep.subr.bf16.mxu0 %v534_v2  ;;  %413 = vmatpush3.bf16.msra.mxu1 %v452_v49 }
  0x48   :  { %414 = vmatprep.subr.bf16.mxu1 %v534_v2 }
  0x4a   :  { %395 = vmatpush3.bf16.msra.mxu0 %v445_v16 }
  0x4b   :  { %415 = vmatpush3.bf16.msra.mxu1 %v453_v50 }
  0xab   :  { %v57_v28 = vpop.permute.xlu0 %56  ;;  %v79_v31 = vpop.permute.xlu1 %78 }
  0xac   :  { %v63_v33 = vmul.f32 %v62_v26, %v57_v28  ;;  %v85_v42 = vmul.f32 %v84_v36, %v79_v31 }
  0xae   :  { %v64_v40 = vadd.f32 %v343_v35, %v63_v33 }
  0xb0   :  { %v67_v38 = vpop.permute.xlu0 %66  ;;  %v89_v39 = vpop.permute.xlu1 %88 }
  0xb1   :  { %v73_v41 = vmul.f32 %v72_v34, %v67_v38  ;;  %v95_v44 = vmul.f32 %v94_v37, %v89_v39 }
  0xb3   :  { %v74_v43 = vadd.f32 %v73_v41, %v64_v40 }
  0xb5   :  { %v86_v45 = vadd.f32 %v85_v42, %v74_v43 }
  0xb7   :  { %v96_v46 = vadd.f32 %v95_v44, %v86_v45 }
  0xb9   :  { %v97_v47 = vmax.f32 %v96_v46, 0.0 }
  0xbb   :  { %v115_v48 = vpack.c.bf16 %v97_v47, %v97_v47 }
  0xbd   :  { %397 = vmatmul.mubr.bf16.vlgmr.msra.gmra.mrb[0].mxu0 %v115_v48 }
 0x190   :  { %v204_v52 = vpop.f32.mrb[0].mxu0 }
 0x191   :  { %v205_v53 = vadd.f32 %v344_v51, %v204_v52  ;;  %v398_v54 = vpop.f32.mrb[1].mxu0 }
 0x192   :  { %v207_v55 = vpop.f32.mrb[2].mxu0 }
 0x193   :  { %v210_v56 = vmax.f32 %v205_v53, 0.0  ;;  %v399_v57 = vpop.f32.mrb[3].mxu0 }
 0x195   :  { %v228_v58 = vpack.c.bf16 %v210_v56, %v210_v56 }
 0x197   :  { %417 = vmatmul.mubr.bf16.vlgmr.msra.gmra.mrb[0].mxu1 %v228_v58 }
 0x26a   :  { %v317_v60 = vpop.f32.mrb[0].mxu1 }
 0x26b   :  { %v318_v61 = vadd.f32 %v353_v59, %v317_v60  ;;  %v418_v62 = vpop.f32.mrb[1].mxu1 }
 0x26c   :  { %v320_v63 = vpop.f32.mrb[2].mxu1 }
 0x26d   :  { %324 = vst.msk [vmem:[#allocation7] sm:$0xff] %vm323_vm1, %v318_v61  ;;  %v419_v0 = vpop.f32.mrb[3].mxu1 }
 0x26e   :  { %329 = vsyncadd [#allocation4], 96  ;;  %s538_s18 = smov [#allocation7]  }
 0x26f   :  { %s330_s19 = sshll.u32 %s538_s18, 4  ;;  %s331_s19 = int_to_ptr.vmem [resolvable:$true] %s330_s19 }
 0x270   :  { %s498_s20 = scalar_lea.vmem %s331_s19, 32  ;;  %s502_s21 = scalar_lea.vmem %s331_s19, 128 }
 0x271   :  { %p499_p2 = scmp.ne.s32.totalorder %s331_s19, %s498_s20  ;;  %p503_p3 = scmp.lt.s32.totalorder %s331_s19, %s331_s19 }
 0x272   :  { %p504_p4 = scmp.lt.s32.totalorder %s502_s21, %s498_s20 }
 0x274   :  { %p505_p5 = por %p504_p4, %p503_p3 }
 0x276   :  { %p506_p6 = pnand %p505_p5, %p499_p2 }
 0x278   :  { %509 = shalt.err (!%p506_p6)
}
 0x279   :  { %s510_s25 = scalar_lea.hbm %s631_s3, 32 }
 0x27a   :  { %p511_p7 = scmp.ne.s32.totalorder %s631_s3, %s510_s25  ;;  %p514_p8 = scmp.lt.u32.totalorder %s510_s25, %s631_s3 }
 0x27c   :  { %p516_p9 = pnand %p514_p8, %p511_p7 }
 0x27e   :  { %519 = shalt.err (!%p516_p9)
}
 0x27f   :  { %336 = dma.vmem_to_hbm [thread:$0]  %s331_s19, 32, %s631_s3, [#allocation4], %s527_s23, %s527_s23, %s528_s24  }
 0x280   :  { %524 = dma.done.wait [#allocation4], 128  }
 0x281   :  { %525 = vsyncadd [#allocation4], 4294967168 }
 0x282   :  { %340 = vsyncpa [#allocation3], 1 }
 0x283   :  { %341 = vsyncpa [#allocation6], 1 }
 0x284   :  { %342 = vsyncpa [#allocation4], 1 }

</bundles_post_ra>
